<compile_context>
chip_gen: v7x
topology: tpu7x:2x2x1
jax: 0.10.0
libtpu: 0.0.40
codegen_flags: <defaults>
</compile_context>

<pallas_src>
import jax
import jax.numpy as jnp
from jax.experimental import pallas as pl
from jax.experimental.pallas import tpu as pltpu

IN_DIM = 784
HID_DIM = 200
OUT_DIM = 10
HID_PAD = 256          # lane-dense hidden dim (multiple of 128; matches 256-wide MXU)
OUT_PAD = 128          # lane-dense class slab for the in-VMEM softmax
NEG_BIG = -1e30        # padded-logit fill (kept f32) -> exp underflows to exactly 0.0


def mlp_kernel(x_ref, w1_ref, b1_ref, w2_ref, b2_ref, o_ref):
    # x_ref : (tb, IN_DIM)       f32  (cast to bf16 here, hidden under the DMA)
    # w1_ref: (IN_DIM, HID_PAD)  bf16   b1_ref: (1, HID_PAD) f32 (pad cols = 0)
    # w2_ref: (HID_PAD, OUT_PAD) bf16   b2_ref: (1, OUT_PAD) f32 (pad lanes = -1e30)
    # o_ref : (tb, OUT_DIM)      f32  (only the 10 real class lanes are stored)
    x = x_ref[...].astype(jnp.bfloat16)

    # Linear1: bf16 operands, f32 MXU accumulation, bias + ReLU.
    h = jnp.dot(x, w1_ref[...], preferred_element_type=jnp.float32) + b1_ref[...]
    h = jnp.maximum(h, 0.0).astype(jnp.bfloat16)

    # Linear2 into the lane-dense 128-wide padded class slab.
    logits = jnp.dot(h, w2_ref[...], preferred_element_type=jnp.float32) + b2_ref[...]

    # Numerically stable softmax. Padded lanes hold -1e30 -> exp() == 0 there,
    # so the denominator only sees the 10 real classes. Exact division keeps
    # row sums at 1.0 to f32 precision (denom is only (tb, 1) -> negligible).
    m = jnp.max(logits, axis=-1, keepdims=True)
    e = jnp.exp(logits - m)
    denom = jnp.sum(e, axis=-1, keepdims=True)
    probs = e / denom

    # Store only the real class columns -> direct (B, 10) output, no post-slice.
    o_ref[...] = probs[:, :OUT_DIM].astype(o_ref.dtype)


def _num_tensorcores_per_chip():
    """Best-effort chip detection (v7x has 2 TensorCores per chip)."""
    try:
        kind = jax.devices()[0].device_kind.lower()
    except Exception:
        return 1
    return 2 if ("v7" in kind or "7x" in kind) else 1


def _pick_tile_b(B, cap=1024):
    """Batch tile for a cdiv grid.

    - Rows are a multiple of 8 (sublane) unless the tile equals the full batch.
    - Cap 1024 keeps the f32 x double-buffer (~6.3 MiB) well under v7x's
      64 MiB physical / 32 MiB scoped VMEM; mem-bound kernels are already at
      ~85-86% of HBM roofline at 512-1024 row tiles.
    - v5e/v6e (single TensorCore): one largest tile (fewest ~0.35 us grid steps).
    - v7x (2 TensorCores): aim for >=4 steps so each core gets >=2 steps and
      keeps per-core DMA/compute double-buffering on top of the megacore split.
    """
    min_steps = 4 if (_num_tensorcores_per_chip() >= 2 and B >= 32) else 1
    if min_steps == 1:
        return B if B <= cap else cap
    tile = (B // min_steps) // 8 * 8
    return min(cap, max(8, tile))


def mlp_forward(x, w1, b1, w2, b2, *, tile_b=None):
    B = x.shape[0]

    # bf16 MXU weight operands. Hidden dim padded 200 -> 256 with zero columns
    # (w1/b1) and zero rows (w2): mathematically inert, lane-dense h. Class dim
    # padded 10 -> 128 with zero weight columns and -1e30 *f32* bias in padded
    # lanes so exp() is exactly 0 there.
    w1_p = jnp.zeros((IN_DIM, HID_PAD), jnp.bfloat16).at[:, :HID_DIM].set(
        w1.astype(jnp.bfloat16))
    b1_p = jnp.zeros((1, HID_PAD), jnp.float32).at[:, :HID_DIM].set(
        b1.reshape(1, HID_DIM).astype(jnp.float32))
    w2_p = jnp.zeros((HID_PAD, OUT_PAD), jnp.bfloat16).at[:HID_DIM, :OUT_DIM].set(
        w2.astype(jnp.bfloat16))
    b2_p = jnp.full((1, OUT_PAD), NEG_BIG, jnp.float32).at[:, :OUT_DIM].set(
        b2.reshape(1, OUT_DIM).astype(jnp.float32))

    if tile_b is None:
        tile_b = _pick_tile_b(B)
    grid = (pl.cdiv(B, tile_b),)

    flops = 2 * B * (IN_DIM * HID_PAD + HID_PAD * OUT_PAD)
    bytes_accessed = (B * IN_DIM * 4                      # x, f32 (cast in-kernel)
                      + w1_p.size * 2 + w2_p.size * 2     # bf16 weights (resident)
                      + b1_p.size * 4 + b2_p.size * 4     # f32 biases
                      + B * OUT_DIM * 4)                  # direct (B, 10) f32 output

    out = pl.pallas_call(
        mlp_kernel,
        out_shape=jax.ShapeDtypeStruct((B, OUT_DIM), jnp.float32),
        grid_spec=pltpu.PrefetchScalarGridSpec(
            num_scalar_prefetch=0,
            grid=grid,
            in_specs=[
                # x tile streamed (f32) over the batch grid axis.
                pl.BlockSpec((tile_b, IN_DIM), lambda i: (i, 0)),
                # Weights/biases: constant index maps -> Pallas keeps them
                # VMEM-resident and does not re-DMA them per grid step.
                pl.BlockSpec((IN_DIM, HID_PAD), lambda i: (0, 0)),
                pl.BlockSpec((1, HID_PAD), lambda i: (0, 0)),
                pl.BlockSpec((HID_PAD, OUT_PAD), lambda i: (0, 0)),
                pl.BlockSpec((1, OUT_PAD), lambda i: (0, 0)),
            ],
            # (tile_b, 10): last block dim equals the full array dim -> legal,
            # and the output path writes only 40 B/row.
            out_specs=pl.BlockSpec((tile_b, OUT_DIM), lambda i: (i, 0)),
        ),
        compiler_params=pltpu.CompilerParams(
            # Batch axis is independent -> shards across TensorCores on v7x.
            dimension_semantics=("parallel",),
            # Headroom for 1024-row f32 x tiles; safe on v5e/v6e/v7x.
            vmem_limit_bytes=32 * 1024 * 1024,
        ),
        cost_estimate=pl.CostEstimate(
            flops=flops,
            transcendentals=B * OUT_PAD,
            bytes_accessed=bytes_accessed,
        ),
    )(x.astype(jnp.float32), w1_p, b1_p, w2_p, b2_p)

    return out


if __name__ == "__main__":
    key = jax.random.PRNGKey(0)
    k_x, k_w1, k_b1, k_w2, k_b2 = jax.random.split(key, 5)

    batch = 8
    x = jax.random.normal(k_x, (batch, IN_DIM), dtype=jnp.float32)

    # Deterministic synthetic parameters (PyTorch-Linear-like uniform init).
    lim1 = 1.0 / (IN_DIM ** 0.5)
    w1 = jax.random.uniform(k_w1, (IN_DIM, HID_DIM), jnp.float32, -lim1, lim1)
    b1 = jax.random.uniform(k_b1, (1, HID_DIM), jnp.float32, -lim1, lim1)
    lim2 = 1.0 / (HID_DIM ** 0.5)
    w2 = jax.random.uniform(k_w2, (HID_DIM, OUT_DIM), jnp.float32, -lim2, lim2)
    b2 = jax.random.uniform(k_b2, (1, OUT_DIM), jnp.float32, -lim2, lim2)

    out = mlp_forward(x, w1, b1, w2, b2)
    out = jax.block_until_ready(out)

    # Reference in plain JAX with the same bf16 operand rounding (f32 math).
    xf = x.astype(jnp.bfloat16).astype(jnp.float32)
    w1f = w1.astype(jnp.bfloat16).astype(jnp.float32)
    w2f = w2.astype(jnp.bfloat16).astype(jnp.float32)
    h = jnp.maximum(xf @ w1f + b1, 0.0)
    hf = h.astype(jnp.bfloat16).astype(jnp.float32)
    ref = jax.nn.softmax(hf @ w2f + b2, axis=-1)

    assert out.shape == (batch, OUT_DIM)
    max_err = float(jnp.max(jnp.abs(out - ref)))
    assert jnp.allclose(out, ref, atol=2e-3, rtol=2e-3), max_err
    # Exact softmax normalization (no approx reciprocal) -> rows sum to 1.0.
    assert jnp.allclose(jnp.sum(out, axis=-1), 1.0, atol=1e-3)

    print("KERNEL_OK")
</pallas_src>

<mosaic_0001>
module attributes {stable_mosaic.version = 11 : i64} {
  func.func @mlp_kernel(%arg0: i32, %arg1: memref<8x784xf32, #tpu.memory_space<vmem>>, %arg2: memref<784x256xbf16, #tpu.memory_space<vmem>>, %arg3: memref<1x256xf32, #tpu.memory_space<vmem>>, %arg4: memref<256x128xbf16, #tpu.memory_space<vmem>>, %arg5: memref<1x128xf32, #tpu.memory_space<vmem>>, %arg6: memref<8x10xf32, #tpu.memory_space<vmem>>) attributes {dimension_semantics = [#tpu.dimension_semantics<parallel>], iteration_bounds = array<i64: 1>, scalar_prefetch = 0 : i64, scratch_operands = 0 : i64, tpu.core_type = #tpu.core_type<tc>, window_params = [{transform_indices = @transform_0, window_bounds = array<i64: 8, 784>}, {pipeline_mode = #tpu.pipeline_mode<synchronous>, transform_indices = @transform_1, window_bounds = array<i64: 784, 256>}, {pipeline_mode = #tpu.pipeline_mode<synchronous>, transform_indices = @transform_2, window_bounds = array<i64: 1, 256>}, {pipeline_mode = #tpu.pipeline_mode<synchronous>, transform_indices = @transform_3, window_bounds = array<i64: 256, 128>}, {pipeline_mode = #tpu.pipeline_mode<synchronous>, transform_indices = @transform_4, window_bounds = array<i64: 1, 128>}, {transform_indices = @transform_5, window_bounds = array<i64: 8, 10>}]} {
    %c0 = arith.constant 0 : index
    %c0_0 = arith.constant 0 : index
    %0 = vector.load %arg1[%c0, %c0_0] : memref<8x784xf32, #tpu.memory_space<vmem>>, vector<8x784xf32>
    %1 = arith.truncf %0 : vector<8x784xf32> to vector<8x784xbf16>
    %c0_1 = arith.constant 0 : index
    %c0_2 = arith.constant 0 : index
    %2 = vector.load %arg2[%c0_1, %c0_2] : memref<784x256xbf16, #tpu.memory_space<vmem>>, vector<784x256xbf16>
    %cst = arith.constant dense<0.000000e+00> : vector<8x256xf32>
    %3 = tpu.matmul %1, %2, %cst {dimension_numbers = #tpu.dot_dimension_numbers<[1], [0], [0], [1], [0, 0, 1, 1], [], []>} : vector<8x784xbf16>, vector<784x256xbf16>, vector<8x256xf32> -> vector<8x256xf32>
    %c0_3 = arith.constant 0 : index
    %c0_4 = arith.constant 0 : index
    %4 = vector.load %arg3[%c0_3, %c0_4] : memref<1x256xf32, #tpu.memory_space<vmem>>, vector<1x256xf32>
    %5 = vector.broadcast %4 : vector<1x256xf32> to vector<8x256xf32>
    %6 = arith.addf %3, %5 : vector<8x256xf32>
    %cst_5 = arith.constant 0.000000e+00 : f32
    %7 = vector.broadcast %cst_5 : f32 to vector<8x256xf32>
    %8 = arith.maximumf %6, %7 : vector<8x256xf32>
    %9 = arith.truncf %8 : vector<8x256xf32> to vector<8x256xbf16>
    %c0_6 = arith.constant 0 : index
    %c0_7 = arith.constant 0 : index
    %10 = vector.load %arg4[%c0_6, %c0_7] : memref<256x128xbf16, #tpu.memory_space<vmem>>, vector<256x128xbf16>
    %cst_8 = arith.constant dense<0.000000e+00> : vector<8x128xf32>
    %11 = tpu.matmul %9, %10, %cst_8 {dimension_numbers = #tpu.dot_dimension_numbers<[1], [0], [0], [1], [0, 0, 1, 1], [], []>} : vector<8x256xbf16>, vector<256x128xbf16>, vector<8x128xf32> -> vector<8x128xf32>
    %c0_9 = arith.constant 0 : index
    %c0_10 = arith.constant 0 : index
    %12 = vector.load %arg5[%c0_9, %c0_10] : memref<1x128xf32, #tpu.memory_space<vmem>>, vector<1x128xf32>
    %13 = vector.broadcast %12 : vector<1x128xf32> to vector<8x128xf32>
    %14 = arith.addf %11, %13 : vector<8x128xf32>
    %cst_11 = arith.constant dense<0xFF800000> : vector<8xf32>
    %15 = vector.multi_reduction <maximumf>, %14, %cst_11 [1] : vector<8x128xf32> to vector<8xf32>
    %16 = vector.shape_cast %15 : vector<8xf32> to vector<8x1xf32>
    %17 = vector.broadcast %16 : vector<8x1xf32> to vector<8x128xf32>
    %18 = arith.subf %14, %17 : vector<8x128xf32>
    %19 = math.exp %18 : vector<8x128xf32>
    %cst_12 = arith.constant dense<0.000000e+00> : vector<8xf32>
    %20 = vector.multi_reduction <add>, %19, %cst_12 [1] : vector<8x128xf32> to vector<8xf32>
    %21 = vector.shape_cast %20 : vector<8xf32> to vector<8x1xf32>
    %22 = vector.broadcast %21 : vector<8x1xf32> to vector<8x128xf32>
    %23 = arith.divf %19, %22 : vector<8x128xf32>
    %24 = vector.extract_strided_slice %23 {offsets = [0, 0], sizes = [8, 10], strides = [1, 1]} : vector<8x128xf32> to vector<8x10xf32>
    %c0_13 = arith.constant 0 : index
    %c0_14 = arith.constant 0 : index
    %25 = vector.load %arg6[%c0_13, %c0_14] : memref<8x10xf32, #tpu.memory_space<vmem>>, vector<8x10xf32>
    tpu.vector_store %arg6[%c0_13, %c0_14], %24 {strides = array<i32>} : memref<8x10xf32, #tpu.memory_space<vmem>>, vector<8x10xf32>,
    return
  }
  func.func @transform_0(%arg0: i32) -> (i32, i32) {
    %c0_i32 = arith.constant 0 : i32
    %c0_i32_0 = arith.constant 0 : i32
    return %arg0, %c0_i32 : i32, i32
  }
  func.func @transform_1(%arg0: i32) -> (i32, i32) {
    %c0_i32 = arith.constant 0 : i32
    %c0_i32_0 = arith.constant 0 : i32
    %c0_i32_1 = arith.constant 0 : i32
    return %c0_i32, %c0_i32_0 : i32, i32
  }
  func.func @transform_2(%arg0: i32) -> (i32, i32) {
    %c0_i32 = arith.constant 0 : i32
    %c0_i32_0 = arith.constant 0 : i32
    %c0_i32_1 = arith.constant 0 : i32
    return %c0_i32, %c0_i32_0 : i32, i32
  }
  func.func @transform_3(%arg0: i32) -> (i32, i32) {
    %c0_i32 = arith.constant 0 : i32
    %c0_i32_0 = arith.constant 0 : i32
    %c0_i32_1 = arith.constant 0 : i32
    return %c0_i32, %c0_i32_0 : i32, i32
  }
  func.func @transform_4(%arg0: i32) -> (i32, i32) {
    %c0_i32 = arith.constant 0 : i32
    %c0_i32_0 = arith.constant 0 : i32
    %c0_i32_1 = arith.constant 0 : i32
    return %c0_i32, %c0_i32_0 : i32, i32
  }
  func.func @transform_5(%arg0: i32) -> (i32, i32) {
    %c0_i32 = arith.constant 0 : i32
    %c0_i32_0 = arith.constant 0 : i32
    return %arg0, %c0_i32 : i32, i32
  }
}

</mosaic_0001>

<bundles_post_ra>
// kernel: tpu_custom_call.1
= control target key start
LH: loop header
LB: loop body
LE: loop exit
PB: predicated region body
PF: predicated region fallthrough
CT: control target
= control target key end

     0   :  { %10 = vsyncpa [#allocation3], 0  ;;  %s1560_s0 = inlined_call_operand.hbm [shape: f32[8,784], index: 0, kind: input, shape index: {}]   ;;  %s1561_s1 = inlined_call_operand.hbm [shape: bf16[784,256], index: 1, kind: input, shape index: {}]   ;;  %s1562_s2 = inlined_call_operand.vmem [shape: f32[1,256], index: 2, kind: input, shape index: {}]   ;;  %s1563_s3 = inlined_call_operand.hbm [shape: bf16[256,128], index: 3, kind: input, shape index: {}]   ;;  %s1564_s4 = inlined_call_operand.vmem [shape: f32[1,128], index: 4, kind: input, shape index: {}]   ;;  %s1565_s5 = inlined_call_operand.hbm [shape: f32[8,10], index: 5, kind: output, shape index: {}]  }
   0x1   :  { %11 = vsyncpa [#allocation6], 0 }
   0x2   :  { %12 = vsyncpa [#allocation4], 0  ;;  %s1467_s18 = smov [#allocation5]   ;;  %s1373_s22 = scalar_lea.hbm %s1561_s1, 12544 }
   0x3   :  { %s28_s19 = sshll.u32 %s1467_s18, 4  ;;  %p1374_p0 = scmp.ne.s32.totalorder %s1561_s1, %s1373_s22  ;;  %s29_s19 = int_to_ptr.vmem [resolvable:$true] %s28_s19 }
   0x4   :  { %p1377_p1 = scmp.lt.u32.totalorder %s1373_s22, %s1561_s1 }
   0x6   :  { %p1379_p2 = pnand %p1377_p1, %p1374_p0 }
   0x8   :  { %1382 = shalt.err (!%p1379_p2)
}
   0x9   :  { %s1383_s27 = scalar_lea.vmem %s29_s19, 12544  ;;  %p1388_p4 = scmp.lt.s32.totalorder %s29_s19, %s29_s19 }
   0xa   :  { %p1384_p3 = scmp.ne.s32.totalorder %s29_s19, %s1383_s27  ;;  %p1389_p5 = scmp.lt.s32.totalorder %s1383_s27, %s1383_s27 }
   0xc   :  { %p1390_p6 = por %p1389_p5, %p1388_p4 }
   0xe   :  { %p1391_p7 = pnand %p1390_p6, %p1384_p3 }
  0x10   :  { %1394 = shalt.err (!%p1391_p7)
}
  0x11   :  { %s1468_s28 = smov 128   ;;  %s1469_s29 = smov 8  }
  0x12   :  { %34 = dma.hbm_to_vmem [thread:$0]  %s1561_s1, 12544, %s29_s19, [#allocation6], %s1468_s28, %s1468_s28, %s1469_s29  }
  0x13   :  { %s1470_s7 = smov [#allocation2]   ;;  %s1471_s9 = smov [#allocation7]  }
  0x14   :  { %s19_s8 = sshll.u32 %s1470_s7, 4  ;;  %s42_s10 = sshll.u32 %s1471_s9, 4  ;;  %s20_s8 = int_to_ptr.vmem [resolvable:$true] %s19_s8  ;;  %s43_s10 = int_to_ptr.vmem [resolvable:$true] %s42_s10 }
  0x15   :  { %s1395_s13 = scalar_lea.hbm %s1560_s0, 896 }
  0x16   :  { %p1396_p8 = scmp.ne.s32.totalorder %s1560_s0, %s1395_s13  ;;  %p1399_p9 = scmp.lt.u32.totalorder %s1395_s13, %s1560_s0 }
  0x18   :  { %p1401_p10 = pnand %p1399_p9, %p1396_p8 }
  0x1a   :  { %1404 = shalt.err (!%p1401_p10)
}
  0x1b   :  { %s1405_s1 = scalar_lea.vmem %s20_s8, 896  ;;  %p1410_p12 = scmp.lt.s32.totalorder %s20_s8, %s20_s8 }
  0x1c   :  { %p1406_p11 = scmp.ne.s32.totalorder %s20_s8, %s1405_s1  ;;  %p1411_p13 = scmp.lt.s32.totalorder %s1405_s1, %s1405_s1 }
  0x1e   :  { %p1412_p0 = por %p1411_p13, %p1410_p12 }
  0x20   :  { %p1413_p1 = pnand %p1412_p0, %p1406_p11 }
  0x22   :  { %1416 = shalt.err (!%p1413_p1)
}
  0x23   :  { %22 = dma.hbm_to_vmem [thread:$0]  %s1560_s0, 896, %s20_s8, [#allocation3]  }
  0x24   :  { %s1417_s22 = scalar_lea.hbm %s1563_s3, 2048 }
  0x25   :  { %p1418_p2 = scmp.ne.s32.totalorder %s1563_s3, %s1417_s22  ;;  %p1421_p3 = scmp.lt.u32.totalorder %s1417_s22, %s1563_s3 }
  0x27   :  { %p1423_p4 = pnand %p1421_p3, %p1418_p2 }
  0x29   :  { %1426 = shalt.err (!%p1423_p4)
}
  0x2a   :  { %s1427_s27 = scalar_lea.vmem %s43_s10, 2048  ;;  %p1432_p6 = scmp.lt.s32.totalorder %s43_s10, %s43_s10 }
  0x2b   :  { %p1428_p5 = scmp.ne.s32.totalorder %s43_s10, %s1427_s27  ;;  %p1433_p7 = scmp.lt.s32.totalorder %s1427_s27, %s1427_s27 }
  0x2d   :  { %p1434_p8 = por %p1433_p7, %p1432_p6 }
  0x2f   :  { %p1435_p9 = pnand %p1434_p8, %p1428_p5 }
  0x31   :  { %1438 = shalt.err (!%p1435_p9)
}
  0x32   :  { %s1472_s0 = smov 64   ;;  %s1473_s28 = smov 4  }
  0x33   :  { %48 = dma.hbm_to_vmem [thread:$0]  %s1563_s3, 2048, %s43_s10, [#allocation6], %s1472_s0, %s1472_s0, %s1473_s28  }
  0x34   :  { %1461 = dma.done.wait [#allocation3], 896  }
  0x35   :  { %1462 = vsyncadd [#allocation3], 4294966400 }
  0x36   :  { %1463 = dma.done.wait [#allocation6], 14592  }
  0x37   :  { %1464 = vsyncadd [#allocation6], 4294952704  ;;  %v1206_v0 = vld [vmem:[#allocation5 + $0x104] ss:$8 sps:$4 sm:$0xff]   ;;  %v1208_v1 = vld [vmem:[#allocation5 + $0x100] ss:$8 sps:$4 sm:$0xff]  }
  0x38   :  { %720 = vmatprep.subr.bf16.mxu0 %v1206_v0  ;;  %v1209_v2 = vld [vmem:[#allocation5 + $0x114] ss:$8 sps:$4 sm:$0xff]   ;;  %v1211_v3 = vld [vmem:[#allocation5 + $0x110] ss:$8 sps:$4 sm:$0xff]   ;;  %v1212_v4 = vld [vmem:[#allocation5 + $0x124] ss:$8 sps:$4 sm:$0xff]  }
  0x39   :  { %721 = vmatpush1.bf16.msra.mxu0 %v1208_v1  ;;  %v1214_v5 = vld [vmem:[#allocation5 + $0x120] ss:$8 sps:$4 sm:$0xff]   ;;  %v1215_v6 = vld [vmem:[#allocation5 + $0x134] ss:$8 sps:$4 sm:$0xff]   ;;  %v1217_v7 = vld [vmem:[#allocation5 + $0x130] ss:$8 sps:$4 sm:$0xff]  }
  0x3a   :  { %722 = vmatprep.subr.bf16.mxu0 %v1209_v2  ;;  %v1218_v8 = vld [vmem:[#allocation5 + $0x144] ss:$8 sps:$4 sm:$0xff]   ;;  %v1220_v9 = vld [vmem:[#allocation5 + $0x140] ss:$8 sps:$4 sm:$0xff]   ;;  %v1221_v10 = vld [vmem:[#allocation5 + $0x154] ss:$8 sps:$4 sm:$0xff]  }
  0x3b   :  { %v1223_v11 = vld [vmem:[#allocation5 + $0x150] ss:$8 sps:$4 sm:$0xff]   ;;  %v1248_v12 = vld [vmem:[#allocation5 + $0x4] ss:$8 sps:$4 sm:$0xff]   ;;  %v1250_v13 = vld [vmem:[#allocation5] ss:$8 sps:$4 sm:$0xff]  }
  0x3c   :  { %v1224_v14 = vld [vmem:[#allocation5 + $0x164] ss:$8 sps:$4 sm:$0xff]   ;;  %679 = vmatprep.subr.bf16.mxu1 %v1248_v12  ;;  %v1254_v15 = vld [vmem:[#allocation5 + $0x14] ss:$8 sps:$4 sm:$0xff]   ;;  %v1256_v16 = vld [vmem:[#allocation5 + $0x10] ss:$8 sps:$4 sm:$0xff]  }
  0x3d   :  { %723 = vmatpush1.bf16.msra.mxu0 %v1211_v3  ;;  %680 = vmatpush1.bf16.msra.mxu1 %v1250_v13  ;;  %v1226_v17 = vld [vmem:[#allocation5 + $0x160] ss:$8 sps:$4 sm:$0xff]   ;;  %v1227_v18 = vld [vmem:[#allocation5 + $0x174] ss:$8 sps:$4 sm:$0xff]   ;;  %v1260_v19 = vld [vmem:[#allocation5 + $0x24] ss:$8 sps:$4 sm:$0xff]  }
  0x3e   :  { %724 = vmatprep.subr.bf16.mxu0 %v1212_v4  ;;  %681 = vmatprep.subr.bf16.mxu1 %v1254_v15  ;;  %v64_v20 = vld [vmem:[#allocation2 + $0x18] sm:$0xff]  ;;  %v1229_v23 = vld [vmem:[#allocation5 + $0x170] ss:$8 sps:$4 sm:$0xff]   ;;  %v1266_v25 = vld [vmem:[#allocation5 + $0x34] ss:$8 sps:$4 sm:$0xff]   ;;  %vm675_vm0 = vcmask 130048  }
  0x3f   :  { %v1262_v21 = vld [vmem:[#allocation5 + $0x20] ss:$8 sps:$4 sm:$0xff]   ;;  %v71_v22 = vpack.c.bf16 %v64_v20, %v64_v20  ;;  %v1230_v24 = vld [vmem:[#allocation5 + $0x184] ss:$8 sps:$4 sm:$0xff]   ;;  %v1268_v27 = vld [vmem:[#allocation5 + $0x30] ss:$8 sps:$4 sm:$0xff]  }
  0x40   :  { %v1232_v26 = vld [vmem:[#allocation5 + $0x180] ss:$8 sps:$4 sm:$0xff]   ;;  %v1272_v28 = vld [vmem:[#allocation5 + $0x44] ss:$8 sps:$4 sm:$0xff]   ;;  %v1233_v29 = vld [vmem:[#allocation5 + $0x194] ss:$8 sps:$4 sm:$0xff]  }
  0x41   :  { %725 = vmatpush1.bf16.msra.mxu0 %v1214_v5  ;;  %682 = vmatpush1.bf16.msra.mxu1 %v1256_v16  ;;  %v1235_v30 = vld [vmem:[#allocation5 + $0x190] ss:$8 sps:$4 sm:$0xff]   ;;  %v1274_v31 = vld [vmem:[#allocation5 + $0x40] ss:$8 sps:$4 sm:$0xff]   ;;  %v1278_v32 = vld [vmem:[#allocation5 + $0x54] ss:$8 sps:$4 sm:$0xff]  }
  0x42   :  { %726 = vmatprep.subr.bf16.mxu0 %v1215_v6  ;;  %683 = vmatprep.subr.bf16.mxu1 %v1260_v19  ;;  %v1236_v33 = vld [vmem:[#allocation5 + $0x1a4] ss:$8 sps:$4 sm:$0xff]   ;;  %v1238_v34 = vld [vmem:[#allocation5 + $0x1a0] ss:$8 sps:$4 sm:$0xff]   ;;  %v1280_v35 = vld [vmem:[#allocation5 + $0x50] ss:$8 sps:$4 sm:$0xff]  }
  0x43   :  { %752 = vmatprep.mubr.bf16.mxu0 %v71_v22  ;;  %v1284_v36 = vld [vmem:[#allocation5 + $0x64] ss:$8 sps:$4 sm:$0xff]   ;;  %v1239_v37 = vld [vmem:[#allocation5 + $0x1b4] ss:$8 sps:$4 sm:$0xff]   ;;  %v1241_v38 = vld [vmem:[#allocation5 + $0x1b0] ss:$8 sps:$4 sm:$0xff]  }
  0x44   :  { %v1286_v39 = vld [vmem:[#allocation5 + $0x60] ss:$8 sps:$4 sm:$0xff]   ;;  %v1290_v40 = vld [vmem:[#allocation5 + $0x74] ss:$8 sps:$4 sm:$0xff]   ;;  %v1242_v41 = vld [vmem:[#allocation5 + $0x1c4] ss:$8 sps:$4 sm:$0xff]  }
  0x45   :  { %727 = vmatpush1.bf16.msra.mxu0 %v1217_v7  ;;  %684 = vmatpush1.bf16.msra.mxu1 %v1262_v21  ;;  %v1244_v42 = vld [vmem:[#allocation5 + $0x1c0] ss:$8 sps:$4 sm:$0xff]   ;;  %v1292_v43 = vld [vmem:[#allocation5 + $0x70] ss:$8 sps:$4 sm:$0xff]   ;;  %v1296_v44 = vld [vmem:[#allocation5 + $0x84] ss:$8 sps:$4 sm:$0xff]  }
  0x46   :  { %728 = vmatprep.subr.bf16.mxu0 %v1218_v8  ;;  %685 = vmatprep.subr.bf16.mxu1 %v1266_v25  ;;  %v1245_v45 = vld [vmem:[#allocation5 + $0x1d4] ss:$8 sps:$4 sm:$0xff]   ;;  %v1247_v46 = vld [vmem:[#allocation5 + $0x1d0] ss:$8 sps:$4 sm:$0xff]   ;;  %v1298_v47 = vld [vmem:[#allocation5 + $0x80] ss:$8 sps:$4 sm:$0xff]  }
  0x47   :  { %v1302_v48 = vld [vmem:[#allocation5 + $0x94] ss:$8 sps:$4 sm:$0xff]   ;;  %v1251_v49 = vld [vmem:[#allocation5 + $0x1e4] ss:$8 sps:$4 sm:$0xff]   ;;  %v1253_v50 = vld [vmem:[#allocation5 + $0x1e0] ss:$8 sps:$4 sm:$0xff]  }
  0x48   :  { %v1304_v51 = vld [vmem:[#allocation5 + $0x90] ss:$8 sps:$4 sm:$0xff]   ;;  %v1308_v52 = vld [vmem:[#allocation5 + $0xa4] ss:$8 sps:$4 sm:$0xff]   ;;  %v1257_v53 = vld [vmem:[#allocation5 + $0x1f4] ss:$8 sps:$4 sm:$0xff]  }
  0x49   :  { %729 = vmatpush1.bf16.msra.mxu0 %v1220_v9  ;;  %686 = vmatpush1.bf16.msra.mxu1 %v1268_v27  ;;  %v1259_v54 = vld [vmem:[#allocation5 + $0x1f0] ss:$8 sps:$4 sm:$0xff]   ;;  %v1310_v56 = vld [vmem:[#allocation5 + $0xa0] ss:$8 sps:$4 sm:$0xff]   ;;  %v1314_v57 = vld [vmem:[#allocation5 + $0xb4] ss:$8 sps:$4 sm:$0xff]  }
  0x4a   :  { %730 = vmatprep.subr.bf16.mxu0 %v1221_v10  ;;  %687 = vmatprep.subr.bf16.mxu1 %v1272_v28  ;;  %v63_v55 = vld [vmem:[#allocation2 + $0x10] sm:$0xff]  ;;  %v1265_v58 = vld [vmem:[#allocation5 + $0x204] ss:$8 sps:$4 sm:$0xff]   ;;  %v62_v61 = vld [vmem:[#allocation2 + $0x8] sm:$0xff]  ;;  %s1475_s8 = smov [#allocation8]   ;;  %vm1031_vm1 = vcmask 80896  }
  0x4b   :  { %v70_v59 = vpack.c.bf16 %v63_v55, %v63_v55  ;;  %v1316_v60 = vld [vmem:[#allocation5 + $0xb0] ss:$8 sps:$4 sm:$0xff]   ;;  %v1263_v62 = vld [vmem:[#allocation5 + $0x200] ss:$8 sps:$4 sm:$0xff]   ;;  %v1320_v63 = vld [vmem:[#allocation5 + $0xc4] ss:$8 sps:$4 sm:$0xff]   ;;  %v69_v0 = vpack.c.bf16 %v62_v61, %v62_v61 }
  0x4c   :  { %v1271_v1 = vld [vmem:[#allocation5 + $0x214] ss:$8 sps:$4 sm:$0xff]   ;;  %v1322_v2 = vld [vmem:[#allocation5 + $0xc0] ss:$8 sps:$4 sm:$0xff]   ;;  %v1269_v4 = vld [vmem:[#allocation5 + $0x210] ss:$8 sps:$4 sm:$0xff]  }
  0x4d   :  { %731 = vmatpush1.bf16.msra.mxu0 %v1223_v11  ;;  %688 = vmatpush1.bf16.msra.mxu1 %v1274_v31  ;;  %v66_v3 = vld [vmem:[#allocation2 + $0x28] sm:$0xff]  ;;  %v1277_v7 = vld [vmem:[#allocation5 + $0x224] ss:$8 sps:$4 sm:$0xff]   ;;  %v1275_v8 = vld [vmem:[#allocation5 + $0x220] ss:$8 sps:$4 sm:$0xff]   ;;  %s1039_s9 = sshll.u32 %s1475_s8, 4  ;;  %s1040_s9 = int_to_ptr.vmem [resolvable:$true] %s1039_s9 }
  0x4e   :  { %732 = vmatprep.subr.bf16.mxu0 %v1224_v14  ;;  %689 = vmatprep.subr.bf16.mxu1 %v1278_v32  ;;  %v1326_v5 = vld [vmem:[#allocation5 + $0xd4] ss:$8 sps:$4 sm:$0xff]   ;;  %v73_v6 = vpack.c.bf16 %v66_v3, %v66_v3  ;;  %v1328_v9 = vld [vmem:[#allocation5 + $0xd0] ss:$8 sps:$4 sm:$0xff]   ;;  %v1332_v10 = vld [vmem:[#allocation5 + $0xe4] ss:$8 sps:$4 sm:$0xff]   ;;  %p1444_p11 = scmp.lt.s32.totalorder %s1040_s9, %s1040_s9 }
  0x4f   :  { %711 = vmatprep.mubr.bf16.mxu1 %v69_v0  ;;  %v1283_v11 = vld [vmem:[#allocation5 + $0x234] ss:$8 sps:$4 sm:$0xff]   ;;  %v1281_v12 = vld [vmem:[#allocation5 + $0x230] ss:$8 sps:$4 sm:$0xff]   ;;  %v1334_v13 = vld [vmem:[#allocation5 + $0xe0] ss:$8 sps:$4 sm:$0xff]  }
  0x50   :  { %v1338_v14 = vld [vmem:[#allocation5 + $0xf4] ss:$8 sps:$4 sm:$0xff]   ;;  %v1289_v15 = vld [vmem:[#allocation5 + $0x244] ss:$8 sps:$4 sm:$0xff]   ;;  %v1340_v16 = vld [vmem:[#allocation5 + $0xf0] ss:$8 sps:$4 sm:$0xff]  }
  0x51   :  { %733 = vmatpush1.bf16.msra.mxu0 %v1226_v17  ;;  %690 = vmatpush1.bf16.msra.mxu1 %v1280_v35  ;;  %v61_v17 = vld [vmem:[#allocation2] sm:$0xff]  ;;  %v1295_v20 = vld [vmem:[#allocation5 + $0x254] ss:$8 sps:$4 sm:$0xff]   ;;  %v1305_v32 = vld [vmem:[#allocation5 + $0x270] ss:$8 sps:$4 sm:$0xff]  }
  0x52   :  { %734 = vmatprep.subr.bf16.mxu0 %v1227_v18  ;;  %691 = vmatprep.subr.bf16.mxu1 %v1284_v36  ;;  %v1287_v18 = vld [vmem:[#allocation5 + $0x240] ss:$8 sps:$4 sm:$0xff]   ;;  %v1349_v19 = vld [vmem:[#allocation5 + $0x304] ss:$8 sps:$4 sm:$0xff]   ;;  %v68_v21 = vpack.c.bf16 %v61_v17, %v61_v17  ;;  %v67_v27 = vld [vmem:[#allocation2 + $0x30] sm:$0xff] }
  0x53   :  { %v1347_v22 = vld [vmem:[#allocation5 + $0x300] ss:$8 sps:$4 sm:$0xff]   ;;  %v1301_v25 = vld [vmem:[#allocation5 + $0x264] ss:$8 sps:$4 sm:$0xff]   ;;  %v1354_v31 = vld [vmem:[#allocation7] sm:$0xff]  }
  0x54   :  { %v1299_v28 = vld [vmem:[#allocation5 + $0x260] ss:$8 sps:$4 sm:$0xff]   ;;  %v1356_v35 = vld [vmem:[#allocation7 + $0x8] sm:$0xff]  }
  0x55   :  { %735 = vmatpush1.bf16.msra.mxu0 %v1229_v23  ;;  %692 = vmatpush1.bf16.msra.mxu1 %v1286_v39  ;;  %v1293_v23 = vld [vmem:[#allocation5 + $0x250] ss:$8 sps:$4 sm:$0xff]   ;;  %v1311_v36 = vld [vmem:[#allocation5 + $0x280] ss:$8 sps:$4 sm:$0xff]  }
  0x56   :  { %736 = vmatprep.subr.bf16.mxu0 %v1230_v24  ;;  %693 = vmatprep.subr.bf16.mxu1 %v1290_v40  ;;  %v1353_v24 = vld [vmem:[#allocation7 + $0x40] sm:$0xff]   ;;  %v1358_v39 = vld [vmem:[#allocation7 + $0x10] sm:$0xff]   ;;  %v1359_v55 = vld [vmem:[#allocation7 + $0x58] sm:$0xff]  }
  0x57   :  { %v1317_v40 = vld [vmem:[#allocation5 + $0x290] ss:$8 sps:$4 sm:$0xff]   ;;  %v1365_v61 = vld [vmem:[#allocation7 + $0x70] sm:$0xff]   ;;  %v1368_v0 = vld [vmem:[#allocation7 + $0x38] sm:$0xff]  }
  0x59   :  { %737 = vmatpush1.bf16.msra.mxu0 %v1232_v26  ;;  %694 = vmatpush1.bf16.msra.mxu1 %v1292_v43  ;;  %v1474_v26 = vmov 0   ;;  %v1331_v43 = vld [vmem:[#allocation5 + $0x2b4] ss:$8 sps:$4 sm:$0xff]  }
  0x5a   :  { %738 = vmatprep.subr.bf16.mxu0 %v1233_v29  ;;  %695 = vmatprep.subr.bf16.mxu1 %v1296_v44  ;;  %v1307_v29 = vld [vmem:[#allocation5 + $0x274] ss:$8 sps:$4 sm:$0xff]   ;;  %v1329_v44 = vld [vmem:[#allocation5 + $0x2b0] ss:$8 sps:$4 sm:$0xff]  }
  0x5d   :  { %739 = vmatpush1.bf16.msra.mxu0 %v1235_v30  ;;  %696 = vmatpush1.bf16.msra.mxu1 %v1298_v47  ;;  %v74_v30 = vpack.c.bf16 %v67_v27, %v67_v27  ;;  %v1343_v47 = vld [vmem:[#allocation5 + $0x2d4] ss:$8 sps:$4 sm:$0xff]  }
  0x5e   :  { %740 = vmatprep.subr.bf16.mxu0 %v1236_v33  ;;  %697 = vmatprep.subr.bf16.mxu1 %v1302_v48  ;;  %v1355_v33 = vld [vmem:[#allocation7 + $0x48] sm:$0xff]  }
  0x5f   :  { %v1341_v48 = vld [vmem:[#allocation5 + $0x2d0] ss:$8 sps:$4 sm:$0xff]  }
  0x61   :  { %741 = vmatpush1.bf16.msra.mxu0 %v1238_v34  ;;  %698 = vmatpush1.bf16.msra.mxu1 %v1304_v51  ;;  %v1313_v34 = vld [vmem:[#allocation5 + $0x284] ss:$8 sps:$4 sm:$0xff]   ;;  %v1352_v51 = vld [vmem:[#allocation5 + $0x2f4] ss:$8 sps:$4 sm:$0xff]  }
  0x62   :  { %742 = vmatprep.subr.bf16.mxu0 %v1239_v37  ;;  %699 = vmatprep.subr.bf16.mxu1 %v1308_v52  ;;  %v1357_v37 = vld [vmem:[#allocation7 + $0x50] sm:$0xff]   ;;  %v1350_v52 = vld [vmem:[#allocation5 + $0x2f0] ss:$8 sps:$4 sm:$0xff]  }
  0x65   :  { %743 = vmatpush1.bf16.msra.mxu0 %v1241_v38  ;;  %700 = vmatpush1.bf16.msra.mxu1 %v1310_v56  ;;  %v1319_v38 = vld [vmem:[#allocation5 + $0x294] ss:$8 sps:$4 sm:$0xff]   ;;  %v1360_v56 = vld [vmem:[#allocation7 + $0x18] sm:$0xff]  }
  0x66   :  { %744 = vmatprep.subr.bf16.mxu0 %v1242_v41  ;;  %701 = vmatprep.subr.bf16.mxu1 %v1314_v57  ;;  %v1325_v41 = vld [vmem:[#allocation5 + $0x2a4] ss:$8 sps:$4 sm:$0xff]   ;;  %v1361_v57 = vld [vmem:[#allocation7 + $0x60] sm:$0xff]  }
  0x69   :  { %745 = vmatpush1.bf16.msra.mxu0 %v1244_v42  ;;  %702 = vmatpush1.bf16.msra.mxu1 %v1316_v60  ;;  %v1323_v42 = vld [vmem:[#allocation5 + $0x2a0] ss:$8 sps:$4 sm:$0xff]   ;;  %v1364_v60 = vld [vmem:[#allocation7 + $0x28] sm:$0xff]  }
  0x6a   :  { %746 = vmatprep.subr.bf16.mxu0 %v1245_v45  ;;  %703 = vmatprep.subr.bf16.mxu1 %v1320_v63  ;;  %v1337_v45 = vld [vmem:[#allocation5 + $0x2c4] ss:$8 sps:$4 sm:$0xff]  }
  0x6b   :  { %v1367_v63 = vld [vmem:[#allocation7 + $0x78] sm:$0xff]  }
  0x6d   :  { %747 = vmatpush1.bf16.msra.mxu0 %v1247_v46  ;;  %704 = vmatpush1.bf16.msra.mxu1 %v1322_v2  ;;  %v1335_v46 = vld [vmem:[#allocation5 + $0x2c0] ss:$8 sps:$4 sm:$0xff]  }
  0x6e   :  { %748 = vmatprep.subr.bf16.mxu0 %v1251_v49  ;;  %705 = vmatprep.subr.bf16.mxu1 %v1326_v5  ;;  %v1346_v49 = vld [vmem:[#allocation5 + $0x2e4] ss:$8 sps:$4 sm:$0xff]  }
  0x71   :  { %749 = vmatpush1.bf16.msra.mxu0 %v1253_v50  ;;  %706 = vmatpush1.bf16.msra.mxu1 %v1328_v9  ;;  %v1344_v50 = vld [vmem:[#allocation5 + $0x2e0] ss:$8 sps:$4 sm:$0xff]   ;;  %v175_v9 = vlaneseq }
  0x72   :  { %750 = vmatprep.subr.bf16.mxu0 %v1257_v53  ;;  %707 = vmatprep.subr.bf16.mxu1 %v1332_v10  ;;  %v65_v53 = vld [vmem:[#allocation2 + $0x20] sm:$0xff] }
  0x73   :  { %v176_v10 = vshrl.u32 %v175_v9, 7 }
  0x75   :  { %751 = vmatpush1.bf16.msra.mxu0 %v1259_v54  ;;  %708 = vmatpush1.bf16.msra.mxu1 %v1334_v13  ;;  %v72_v54 = vpack.c.bf16 %v65_v53, %v65_v53  ;;  %v181_v13 = vsub.s32 1, %v176_v10 }
  0x76   :  { %761 = vmatprep.subr.bf16.mxu0 %v1265_v58  ;;  %709 = vmatprep.subr.bf16.mxu1 %v1338_v14  ;;  %v1362_v58 = vld [vmem:[#allocation7 + $0x20] sm:$0xff]  }
  0x78   :  { %753 = vmatmul.mubr.bf16.vlgmr.msra.gmra.mrb[0].mxu0 %v70_v59  ;;  %v1363_v59 = vld [vmem:[#allocation7 + $0x68] sm:$0xff]  }
  0x79   :  { %762 = vmatpush1.bf16.msra.mxu0 %v1263_v62  ;;  %793 = vmatprep.mubr.bf16.mxu0 %v73_v6  ;;  %v1366_v62 = vld [vmem:[#allocation7 + $0x30] sm:$0xff]  }
  0x7a   :  { %763 = vmatprep.subr.bf16.mxu0 %v1271_v1  ;;  %710 = vmatpush1.bf16.msra.mxu1 %v1340_v16 }
  0x7b   :  { %802 = vmatprep.subr.bf16.mxu1 %v1349_v19 }
  0x7d   :  { %764 = vmatpush1.bf16.msra.mxu0 %v1269_v4  ;;  %712 = vmatmul.mubr.bf16.vlgmr.msra.gmra.mrb[0].mxu1 %v68_v21 }
  0x7e   :  { %765 = vmatprep.subr.bf16.mxu0 %v1277_v7  ;;  %803 = vmatpush1.bf16.msra.mxu1 %v1347_v22 }
  0x7f   :  { %834 = vmatprep.mubr.bf16.mxu1 %v1474_v26  ;;  %1165 = vmatprep.subr.bf16.mxu1 %v1353_v24 }
  0x81   :  { %766 = vmatpush1.bf16.msra.mxu0 %v1275_v8 }
  0x82   :  { %767 = vmatprep.subr.bf16.mxu0 %v1283_v11  ;;  %v177_v11 = vsub.s32 0, %v176_v10 }
  0x85   :  { %768 = vmatpush1.bf16.msra.mxu0 %v1281_v12  ;;  %1147 = vmatmul.mubr.msk.bf16.vlgmr.msra.gmra.mrb[4].mxu1 %vm675_vm0, %v74_v30  ;;  %v173_v12 = vld [vmem:[%s1562_s2] sm:$0x3] }
  0x86   :  { %769 = vmatprep.subr.bf16.mxu0 %v1289_v15  ;;  %1166 = vmatpush3.bf16.msra.mxu1 %v1354_v31  ;;  %v178_v14 = vrot.slane %v173_v12, %v177_v11  ;;  %v182_v15 = vrot.slane %v173_v12, %v181_v13 }
  0x87   :  { %1167 = vmatprep.subr.bf16.mxu1 %v1355_v33 }
  0x89   :  { %770 = vmatpush1.bf16.msra.mxu0 %v1287_v18 }
  0x8a   :  { %771 = vmatprep.subr.bf16.mxu0 %v1295_v20  ;;  %1168 = vmatpush3.bf16.msra.mxu1 %v1356_v35 }
  0x8b   :  { %1169 = vmatprep.subr.bf16.mxu1 %v1357_v37 }
  0x8d   :  { %772 = vmatpush1.bf16.msra.mxu0 %v1293_v23 }
  0x8e   :  { %773 = vmatprep.subr.bf16.mxu0 %v1301_v25  ;;  %1170 = vmatpush3.bf16.msra.mxu1 %v1358_v39 }
  0x8f   :  { %1171 = vmatprep.subr.bf16.mxu1 %v1359_v55 }
  0x91   :  { %774 = vmatpush1.bf16.msra.mxu0 %v1299_v28 }
  0x92   :  { %775 = vmatprep.subr.bf16.mxu0 %v1307_v29  ;;  %1172 = vmatpush3.bf16.msra.mxu1 %v1360_v56 }
  0x93   :  { %1173 = vmatprep.subr.bf16.mxu1 %v1361_v57 }
  0x95   :  { %776 = vmatpush1.bf16.msra.mxu0 %v1305_v32  ;;  %v1148_v32 = vld [vmem:[%s1564_s4] ss:$0 sm:$0xff]  ;;  %s1439_s4 = scalar_lea.vmem %s1040_s9, 128 }
  0x96   :  { %777 = vmatprep.subr.bf16.mxu0 %v1313_v34  ;;  %1174 = vmatpush3.bf16.msra.mxu1 %v1362_v58  ;;  %p1440_p10 = scmp.ne.s32.totalorder %s1040_s9, %s1439_s4  ;;  %p1445_p12 = scmp.lt.s32.totalorder %s1439_s4, %s1439_s4 }
  0x97   :  { %1175 = vmatprep.subr.bf16.mxu1 %v1363_v59 }
  0x98   :  { %p1446_p13 = por %p1445_p12, %p1444_p11 }
  0x99   :  { %778 = vmatpush1.bf16.msra.mxu0 %v1311_v36 }
  0x9a   :  { %779 = vmatprep.subr.bf16.mxu0 %v1319_v38  ;;  %1176 = vmatpush3.bf16.msra.mxu1 %v1364_v60  ;;  %p1447_p0 = pnand %p1446_p13, %p1440_p10 }
  0x9b   :  { %1177 = vmatprep.subr.bf16.mxu1 %v1365_v61 }
  0x9d   :  { %780 = vmatpush1.bf16.msra.mxu0 %v1317_v40 }
  0x9e   :  { %781 = vmatprep.subr.bf16.mxu0 %v1325_v41  ;;  %1178 = vmatpush3.bf16.msra.mxu1 %v1366_v62 }
  0x9f   :  { %1179 = vmatprep.subr.bf16.mxu1 %v1367_v63 }
  0xa1   :  { %782 = vmatpush1.bf16.msra.mxu0 %v1323_v42 }
  0xa2   :  { %783 = vmatprep.subr.bf16.mxu0 %v1331_v43  ;;  %1180 = vmatpush3.bf16.msra.mxu1 %v1368_v0 }
  0xa5   :  { %784 = vmatpush1.bf16.msra.mxu0 %v1329_v44 }
  0xa6   :  { %785 = vmatprep.subr.bf16.mxu0 %v1337_v45 }
  0xa9   :  { %786 = vmatpush1.bf16.msra.mxu0 %v1335_v46 }
  0xaa   :  { %787 = vmatprep.subr.bf16.mxu0 %v1343_v47 }
  0xad   :  { %788 = vmatpush1.bf16.msra.mxu0 %v1341_v48 }
  0xae   :  { %789 = vmatprep.subr.bf16.mxu0 %v1346_v49 }
  0xb1   :  { %790 = vmatpush1.bf16.msra.mxu0 %v1344_v50 }
  0xb2   :  { %791 = vmatprep.subr.bf16.mxu0 %v1352_v51 }
  0xb5   :  { %792 = vmatpush1.bf16.msra.mxu0 %v1350_v52 }
  0xb8   :  { %794 = vmatmul.mubr.bf16.vlgmr.msra.gmra.mrb[0].mxu0 %v72_v54 }
 0x150   :  { %v713_v1 = vpop.f32.mrb[0].mxu1 }
 0x151   :  { %v715_v2 = vpop.f32.mrb[1].mxu1  ;;  %v714_v16 = vadd.f32 %v713_v1, %v178_v14 }
 0x152   :  { %v717_v3 = vpop.f32.mrb[2].mxu1  ;;  %v716_v17 = vadd.f32 %v715_v2, %v182_v15 }
 0x153   :  { %v718_v4 = vpop.f32.mrb[3].mxu1 }
 0x158   :  { %v836_v5 = vpop.f32.mrb[4].mxu1 }
 0x159   :  { %v838_v6 = vpop.f32.mrb[5].mxu1 }
 0x15a   :  { %v840_v7 = vpop.f32.mrb[6].mxu1 }
 0x15b   :  { %v841_v8 = vpop.f32.mrb[7].mxu1 }
 0x18b   :  { %v795_v18 = vpop.f32.mrb[0].mxu0 }
 0x18c   :  { %v1188_v19 = vadd.f32 %v795_v18, %v714_v16  ;;  %v797_v20 = vpop.f32.mrb[1].mxu0 }
 0x18d   :  { %v1191_v21 = vadd.f32 %v797_v20, %v716_v17  ;;  %v799_v22 = vpop.f32.mrb[2].mxu0 }
 0x18e   :  { %v1189_v23 = vadd.f32 %v1188_v19, %v836_v5  ;;  %v800_v24 = vpop.f32.mrb[3].mxu0 }
 0x18f   :  { %v1192_v25 = vadd.f32 %v1191_v21, %v838_v6 }
 0x190   :  { %v843_v26 = vmax.f32 %v1189_v23, 0.0 }
 0x191   :  { %v844_v27 = vmax.f32 %v1192_v25, 0.0 }
 0x192   :  { %v845_v29 = vpack.c.bf16 %v843_v26, %v843_v26 }
 0x193   :  { %v846_v28 = vpack.c.bf16 %v844_v27, %v844_v27 }
 0x195   :  { %1014 = vmatprep.mubr.bf16.mxu1 %v846_v28 }
 0x196   :  { %1015 = vmatmul.mubr.bf16.vlgmr.msra.gmra.mrb[8].mxu1 %v845_v29 }
 0x269   :  { %v1181_v30 = vpop.f32.mrb[8].mxu1 }
 0x26a   :  { %v1182_v31 = vpop.f32.mrb[9].mxu1 }
 0x26b   :  { %v1183_v33 = vadd.f32 %v1182_v31, %v1181_v30  ;;  %v1184_v34 = vpop.f32.mrb[10].mxu1 }
 0x26c   :  { %v1185_v35 = vpop.f32.mrb[11].mxu1 }
 0x26d   :  { %v1017_v36 = vadd.f32 %v1183_v33, %v1148_v32 }
 0x26f   :  { %1022 = vmax.xlane.f32.xlu0 %v1017_v36 }
 0x2fc   :  { %v1023_v37 = vpop.xlane.xlu0 %1022 }
 0x2fd   :  { %v1024_v38 = vsub.f32 %v1017_v36, %v1023_v37 }
 0x2ff   :  { %v1025_v39 = vmul.f32 1.442695, %v1024_v38 }
 0x301   :  { %1369 = vpow2.f32 %v1025_v39 }
 0x30b   :  { %v1370_v40 = vpop.eup %1369 }
 0x30c   :  { %1027 = vadd.xlane.f32.xlu0 %v1370_v40 }
 0x399   :  { %v1028_v41 = vpop.xlane.xlu0 %1027 }
 0x39a   :  { %1371 = vrcp.f32 %v1028_v41 }
 0x3a4   :  { %v1372_v42 = vpop.eup %1371 }
 0x3a5   :  { %v1030_v43 = vmul.f32 %v1372_v42, %v1370_v40 }
 0x3a7   :  { %1032 = vst.msk [vmem:[#allocation8] sm:$0xff] %vm1031_vm1, %v1030_v43 }
 0x3a8   :  { %1450 = shalt.err (!%p1447_p0)
}
 0x3a9   :  { %s1451_s12 = scalar_lea.hbm %s1565_s5, 128 }
 0x3aa   :  { %p1452_p1 = scmp.ne.s32.totalorder %s1565_s5, %s1451_s12  ;;  %p1455_p2 = scmp.lt.u32.totalorder %s1451_s12, %s1565_s5 }
 0x3ac   :  { %p1457_p3 = pnand %p1455_p2, %p1452_p1 }
 0x3ae   :  { %1460 = shalt.err (!%p1457_p3)
}
 0x3af   :  { %1042 = dma.vmem_to_hbm [thread:$0]  %s1040_s9, 128, %s1565_s5, [#allocation4]  }
 0x3b0   :  { %1465 = dma.done.wait [#allocation4], 128  }
 0x3b1   :  { %1466 = vsyncadd [#allocation4], 4294967168 }
 0x3b2   :  { %1046 = vsyncpa [#allocation3], 1 }
 0x3b3   :  { %1047 = vsyncpa [#allocation6], 1 }
 0x3b4   :  { %1048 = vsyncpa [#allocation4], 1 }

</bundles_post_ra>
